<compile_context>
chip_gen: v5e
topology: v5e:2x2
jax: 0.10.0
libtpu: 0.0.40
codegen_flags: <defaults>
</compile_context>

<pallas_src>
import functools

import jax
import jax.numpy as jnp
from jax.experimental import pallas as pl
from jax.experimental.pallas import tpu as pltpu


def _round_up(a, b):
    return (a + b - 1) // b * b


def _hw_defaults():
    """(tile_bytes, vmem_limit_bytes, tensorcores_per_chip) per TPU generation."""
    vmem_cap = None
    num_tc = 1
    try:
        info = pltpu.get_tpu_info()
        vmem_cap = getattr(info, "vmem_capacity_bytes", None)
        for attr in ("num_cores", "core_count", "num_tensorcores"):
            v = getattr(info, attr, None)
            if isinstance(v, int) and v >= 1:
                num_tc = v
                break
    except Exception:
        pass
    if vmem_cap is not None and vmem_cap >= 128 * 1024 * 1024:
        # v5e / v6e: 128 MiB physical VMEM -> bigger tiles + raised scoped limit.
        return 4 * 1024 * 1024, 64 * 1024 * 1024, num_tc
    # v7x (64 MiB physical) or unknown chip: 2 MiB tiles already sit at ~85% of
    # the HBM roofline and leave headroom for double-buffering + intermediates.
    return 2 * 1024 * 1024, 32 * 1024 * 1024, num_tc


def _dice_partial_kernel(logits_ref, label_ref, numer_ref, denom_ref, *,
                         p, keep_ignore_cmp, ignore_lb):
    """Per-(sample, spatial-split, spatial-tile) partial sums.

    logits_ref : (1, C, T_rows, 128) float block
    label_ref  : (1, 1, T_rows, 128) uint8/int32 block
    numer_ref  : (1, C, 128) float32 lane-wise accumulator (VMEM-resident
                 across the innermost "arbitrary" grid axis)
    denom_ref  : (1, C, 128) float32 lane-wise accumulator
    """
    @pl.when(pl.program_id(2) == 0)
    def _init():
        numer_ref[...] = jnp.zeros_like(numer_ref)
        denom_ref[...] = jnp.zeros_like(denom_ref)

    # TODO(synk): for bf16 inputs on v6e/v7x, keep probs/mask in bf16 and upcast
    # only at the reduction to halve vreg pressure; f32 kept here (v5e-safe).
    x = logits_ref[0].astype(jnp.float32)            # (C, T_rows, 128)
    lab = label_ref[0, 0].astype(jnp.int32)          # (T_rows, 128), widened in VMEM

    # sigmoid(x) = 0.5 * tanh(0.5 * x) + 0.5 : single EUP op + 2 cheap VPU ops.
    # Exactly 0 for the -1e4 padding value.
    probs = 0.5 * jnp.tanh(0.5 * x) + 0.5

    # Boolean one-hot mask along the channel axis, built once and reused for
    # both the numerator and the denominator label-count.
    ch = jax.lax.broadcasted_iota(jnp.int32, x.shape, 0)
    mask = lab[None, :, :] == ch                     # (C, T_rows, 128) bool
    if keep_ignore_cmp:                              # only when 0 <= ignore_lb < C
        mask = mask & (lab != ignore_lb)[None, :, :]
    mask_f = mask.astype(jnp.float32)

    # NOTE: mask_f**p == mask_f holds only for p > 0 (true for the PyTorch
    # defaults); p <= 0 is not supported here.
    if p == 1:
        probs_p = probs
    elif isinstance(p, int) and p > 1:
        probs_p = probs
        for _ in range(p - 1):
            probs_p = probs_p * probs
    else:
        # TODO(synk): non-integer p lowers to exp(p*log(x)) (2 extra EUP ops/elem).
        probs_p = probs ** p

    # Reduce only over the row/sublane axis here (mostly whole-vreg VPU adds);
    # the 128-lane cross-lane reduce is deferred to the plain-JAX glue, keeping
    # XLU work and sub-128-lane accumulator RMWs off the per-tile path.
    # TODO(synk): if profiling still shows VPU/XLU binding on v7x, these sums
    # could be pushed through the idle MXU via a ones-matrix jnp.dot.
    numer_ref[0] += (probs * mask_f).sum(axis=1)     # (C, 128)
    denom_ref[0] += (probs_p + mask_f).sum(axis=1)   # (C, 128)


def batch_soft_dice_loss(logits, label, *, p=1, smooth=1.0, weight=None,
                         ignore_lb=255, hw_splits=None, tile_bytes=None,
                         vmem_limit_bytes=None):
    """JAX/Pallas equivalent of BatchSoftDiceLoss.forward.

    logits : (N, C, H, W) float (f32 or bf16; in-kernel math is f32)
    label  : (N, H, W)    int
    returns scalar loss (float32)
    """
    N, C, H, W = logits.shape
    HW = H * W

    tile_bytes_d, vmem_limit_d, num_tc = _hw_defaults()
    if tile_bytes is None:
        tile_bytes = tile_bytes_d
    if vmem_limit_bytes is None:
        vmem_limit_bytes = vmem_limit_d
    if hw_splits is None:
        # Splitting the spatial axis only pays on multi-TensorCore chips (v7x)
        # when the batch axis alone cannot occupy every core; on 1-TC v5e/v6e
        # it just adds padding, grid steps and an extra host-side reduce.
        hw_splits = 2 if (num_tc >= 2 and N < num_tc) else 1

    # ---- choose spatial tiling (rows of 128 lanes) ---------------------------
    ROW_ALIGN = 32                                   # uint8 blocks need (32, 128)
    elem_bytes = jnp.dtype(logits.dtype).itemsize
    R = -(-HW // 128)                                # rows of 128 lanes (ceil)
    rows_per_split = -(-R // hw_splits)
    t_target = max(ROW_ALIGN,
                   (tile_bytes // (C * 128 * elem_bytes)) // ROW_ALIGN * ROW_ALIGN)

    # Prefer a tile row-count that divides rows_per_split (no padding copy).
    start = min(t_target, _round_up(rows_per_split, ROW_ALIGN))
    T_rows = start
    for cand in range(start, ROW_ALIGN - 1, -ROW_ALIGN):
        if rows_per_split % cand == 0:
            T_rows = cand
            break
    steps = -(-rows_per_split // T_rows)
    R_pad = hw_splits * T_rows * steps
    HW_pad = R_pad * 128

    # ---- prepare inputs ------------------------------------------------------
    use_u8 = (C <= 255) and (0 <= ignore_lb <= 255)
    lab_dtype = jnp.uint8 if use_u8 else jnp.int32
    keep_ignore_cmp = (0 <= ignore_lb < C)

    logits_f = logits.reshape(N, C, HW)
    label_f = label.reshape(N, HW).astype(lab_dtype)
    if HW_pad != HW:
        pad = HW_pad - HW
        # Padded logits -> sigmoid is exactly 0; padded labels carry the ignore
        # value (never equal to a channel index on the no-AND path, explicitly
        # masked on the AND path), so padding contributes nothing to either sum.
        logits_f = jnp.pad(logits_f, ((0, 0), (0, 0), (0, pad)),
                           constant_values=-1e4)
        label_f = jnp.pad(label_f, ((0, 0), (0, pad)),
                          constant_values=ignore_lb)
    logits_f = logits_f.reshape(N, C, R_pad, 128)
    label_f = label_f.reshape(N, 1, R_pad, 128)

    kern = functools.partial(_dice_partial_kernel, p=p,
                             keep_ignore_cmp=keep_ignore_cmp,
                             ignore_lb=ignore_lb)

    # TODO(synk): if xprof shows exposed DMA between steps on v7x, add
    # pipeline_mode=pl.Buffered(3) to the logits BlockSpec.
    numer_lanes, denom_lanes = pl.pallas_call(
        kern,
        out_shape=(
            jax.ShapeDtypeStruct((N * hw_splits, C, 128), jnp.float32),
            jax.ShapeDtypeStruct((N * hw_splits, C, 128), jnp.float32),
        ),
        grid=(N, hw_splits, steps),
        in_specs=[
            pl.BlockSpec((1, C, T_rows, 128),
                         lambda n, s, t: (n, 0, s * steps + t, 0)),
            pl.BlockSpec((1, 1, T_rows, 128),
                         lambda n, s, t: (n, 0, s * steps + t, 0)),
        ],
        out_specs=(
            pl.BlockSpec((1, C, 128), lambda n, s, t: (n * hw_splits + s, 0, 0)),
            pl.BlockSpec((1, C, 128), lambda n, s, t: (n * hw_splits + s, 0, 0)),
        ),
        compiler_params=pltpu.CompilerParams(
            dimension_semantics=("parallel", "parallel", "arbitrary"),
            vmem_limit_bytes=vmem_limit_bytes,
        ),
    )(logits_f, label_f)

    # Tiny (N*hw_splits, C, 128) tensors: final lane + split reduce in plain JAX.
    numer = numer_lanes.reshape(N, hw_splits, C, 128).sum(axis=(1, 3))   # (N, C)
    denom = denom_lanes.reshape(N, hw_splits, C, 128).sum(axis=(1, 3))   # (N, C)

    if weight is not None:
        w = jnp.asarray(weight, jnp.float32).reshape(1, -1)
        numer = numer * w
        denom = denom * w

    numer = jnp.sum(numer)
    denom = jnp.sum(denom)
    loss = 1.0 - (2.0 * numer + smooth) / (denom + smooth)
    return loss


def _reference_loss(logits, label, *, p=1, smooth=1.0, weight=None, ignore_lb=255):
    """Pure-JAX reference reproducing the PyTorch forward semantics."""
    N, C, H, W = logits.shape
    ignore = label == ignore_lb
    lab = jnp.where(ignore, 0, label)
    one_hot = jax.nn.one_hot(lab, C, axis=1, dtype=jnp.float32)      # (N, C, H, W)
    one_hot = jnp.where(ignore[:, None, :, :], 0.0, one_hot)
    probs = jax.nn.sigmoid(logits.astype(jnp.float32))
    numer = jnp.sum(probs * one_hot, axis=(2, 3))
    denom = jnp.sum(probs ** p + one_hot ** p, axis=(2, 3))
    if weight is not None:
        w = jnp.asarray(weight, jnp.float32).reshape(1, -1)
        numer = numer * w
        denom = denom * w
    numer = jnp.sum(numer)
    denom = jnp.sum(denom)
    return 1.0 - (2.0 * numer + smooth) / (denom + smooth)


if __name__ == "__main__":
    key = jax.random.PRNGKey(0)
    k_logits, k_label = jax.random.split(key)

    N, C, H, W = 2, 4, 16, 16
    logits = jax.random.normal(k_logits, (N, C, H, W), dtype=jnp.float32)
    label = jax.random.randint(k_label, (N, H, W), 0, C, dtype=jnp.int32)
    # Sprinkle some ignore pixels (ignore_lb = 255).
    label = label.at[0, 0, :5].set(255)
    label = label.at[1, 3, 2:6].set(255)

    loss = batch_soft_dice_loss(logits, label, p=1, smooth=1.0, ignore_lb=255)
    loss = jax.block_until_ready(loss)

    ref = jax.block_until_ready(
        _reference_loss(logits, label, p=1, smooth=1.0, ignore_lb=255)
    )
    assert jnp.isfinite(loss), "loss is not finite"
    assert jnp.allclose(loss, ref, rtol=1e-5, atol=1e-5), (loss, ref)

    print("KERNEL_OK")
</pallas_src>

<mosaic_0001>
module attributes {stable_mosaic.version = 11 : i64} {
  func.func @_dice_partial_kernel(%arg0: i32, %arg1: i32, %arg2: i32, %arg3: memref<1x4x32x128xf32, #tpu.memory_space<vmem>>, %arg4: memref<1x1x32x128xi8, #tpu.memory_space<vmem>>, %arg5: memref<1x4x128xf32, #tpu.memory_space<vmem>>, %arg6: memref<1x4x128xf32, #tpu.memory_space<vmem>>) attributes {dimension_semantics = [#tpu.dimension_semantics<parallel>, #tpu.dimension_semantics<parallel>, #tpu.dimension_semantics<arbitrary>], iteration_bounds = array<i64: 2, 1, 1>, scalar_prefetch = 0 : i64, scratch_operands = 0 : i64, tpu.core_type = #tpu.core_type<tc>, window_params = [{transform_indices = @transform_0, window_bounds = array<i64: 1, 4, 32, 128>}, {transform_indices = @transform_1, window_bounds = array<i64: 1, 1, 32, 128>}, {transform_indices = @transform_2, window_bounds = array<i64: 1, 4, 128>}, {transform_indices = @transform_3, window_bounds = array<i64: 1, 4, 128>}]} {
    %c0_i32 = arith.constant 0 : i32
    %0 = arith.cmpi eq, %arg2, %c0_i32 : i32
    %1 = arith.extui %0 : i1 to i32
    %c0_i32_0 = arith.constant 0 : i32
    %2 = arith.cmpi ne, %1, %c0_i32_0 : i32
    scf.if %2 {
      %cst_24 = arith.constant 0.000000e+00 : f32
      %37 = vector.broadcast %cst_24 : f32 to vector<1x4x128xf32>
      %c0_25 = arith.constant 0 : index
      %c0_26 = arith.constant 0 : index
      %c0_27 = arith.constant 0 : index
      %38 = vector.load %arg5[%c0_25, %c0_26, %c0_27] : memref<1x4x128xf32, #tpu.memory_space<vmem>>, vector<1x4x128xf32>
      tpu.vector_store %arg5[%c0_25, %c0_26, %c0_27], %37 {strides = array<i32>} : memref<1x4x128xf32, #tpu.memory_space<vmem>>, vector<1x4x128xf32>,
      %cst_28 = arith.constant 0.000000e+00 : f32
      %39 = vector.broadcast %cst_28 : f32 to vector<1x4x128xf32>
      %c0_29 = arith.constant 0 : index
      %c0_30 = arith.constant 0 : index
      %c0_31 = arith.constant 0 : index
      %40 = vector.load %arg6[%c0_29, %c0_30, %c0_31] : memref<1x4x128xf32, #tpu.memory_space<vmem>>, vector<1x4x128xf32>
      tpu.vector_store %arg6[%c0_29, %c0_30, %c0_31], %39 {strides = array<i32>} : memref<1x4x128xf32, #tpu.memory_space<vmem>>, vector<1x4x128xf32>,
    } else {
    }
    %c0 = arith.constant 0 : index
    %c0_1 = arith.constant 0 : index
    %c0_2 = arith.constant 0 : index
    %c0_3 = arith.constant 0 : index
    %3 = vector.load %arg3[%c0, %c0_1, %c0_2, %c0_3] : memref<1x4x32x128xf32, #tpu.memory_space<vmem>>, vector<1x4x32x128xf32>
    %4 = vector.shape_cast %3 : vector<1x4x32x128xf32> to vector<4x32x128xf32>
    %c0_4 = arith.constant 0 : index
    %c0_5 = arith.constant 0 : index
    %c0_6 = arith.constant 0 : index
    %c0_7 = arith.constant 0 : index
    %5 = vector.load %arg4[%c0_4, %c0_5, %c0_6, %c0_7] : memref<1x1x32x128xi8, #tpu.memory_space<vmem>>, vector<1x1x32x128xi8>
    %6 = vector.shape_cast %5 : vector<1x1x32x128xi8> to vector<32x128xi8>
    %7 = arith.extui %6 : vector<32x128xi8> to vector<32x128xi32>
    %cst = arith.constant 5.000000e-01 : f32
    %8 = vector.broadcast %cst : f32 to vector<4x32x128xf32>
    %9 = arith.mulf %8, %4 : vector<4x32x128xf32>
    %10 = math.tanh %9 : vector<4x32x128xf32>
    %cst_8 = arith.constant 5.000000e-01 : f32
    %11 = vector.broadcast %cst_8 : f32 to vector<4x32x128xf32>
    %12 = arith.mulf %11, %10 : vector<4x32x128xf32>
    %cst_9 = arith.constant 5.000000e-01 : f32
    %13 = vector.broadcast %cst_9 : f32 to vector<4x32x128xf32>
    %14 = arith.addf %12, %13 : vector<4x32x128xf32>
    %15 = tpu.iota {dimensions = array<i32: 0>} : vector<4x32x128xi32>
    %16 = vector.shape_cast %7 : vector<32x128xi32> to vector<1x32x128xi32>
    %17 = vector.broadcast %16 : vector<1x32x128xi32> to vector<4x32x128xi32>
    %18 = arith.cmpi eq, %17, %15 : vector<4x32x128xi32>
    %19 = arith.extui %18 : vector<4x32x128xi1> to vector<4x32x128xi32>
    %20 = arith.sitofp %19 : vector<4x32x128xi32> to vector<4x32x128xf32>
    %c0_10 = arith.constant 0 : index
    %c0_11 = arith.constant 0 : index
    %c0_12 = arith.constant 0 : index
    %21 = vector.load %arg5[%c0_10, %c0_11, %c0_12] : memref<1x4x128xf32, #tpu.memory_space<vmem>>, vector<1x4x128xf32>
    %22 = vector.shape_cast %21 : vector<1x4x128xf32> to vector<4x128xf32>
    %23 = arith.mulf %14, %20 : vector<4x32x128xf32>
    %cst_13 = arith.constant dense<0.000000e+00> : vector<4x128xf32>
    %24 = vector.multi_reduction <add>, %23, %cst_13 [1] : vector<4x32x128xf32> to vector<4x128xf32>
    %25 = arith.addf %22, %24 : vector<4x128xf32>
    %c0_14 = arith.constant 0 : index
    %c0_15 = arith.constant 0 : index
    %c0_16 = arith.constant 0 : index
    %26 = vector.load %arg5[%c0_14, %c0_15, %c0_16] : memref<1x4x128xf32, #tpu.memory_space<vmem>>, vector<1x4x128xf32>
    %27 = vector.shape_cast %26 : vector<1x4x128xf32> to vector<4x128xf32>
    %28 = vector.shape_cast %25 : vector<4x128xf32> to vector<1x4x128xf32>
    tpu.vector_store %arg5[%c0_14, %c0_15, %c0_16], %28 {strides = array<i32>} : memref<1x4x128xf32, #tpu.memory_space<vmem>>, vector<1x4x128xf32>,
    %c0_17 = arith.constant 0 : index
    %c0_18 = arith.constant 0 : index
    %c0_19 = arith.constant 0 : index
    %29 = vector.load %arg6[%c0_17, %c0_18, %c0_19] : memref<1x4x128xf32, #tpu.memory_space<vmem>>, vector<1x4x128xf32>
    %30 = vector.shape_cast %29 : vector<1x4x128xf32> to vector<4x128xf32>
    %31 = arith.addf %14, %20 : vector<4x32x128xf32>
    %cst_20 = arith.constant dense<0.000000e+00> : vector<4x128xf32>
    %32 = vector.multi_reduction <add>, %31, %cst_20 [1] : vector<4x32x128xf32> to vector<4x128xf32>
    %33 = arith.addf %30, %32 : vector<4x128xf32>
    %c0_21 = arith.constant 0 : index
    %c0_22 = arith.constant 0 : index
    %c0_23 = arith.constant 0 : index
    %34 = vector.load %arg6[%c0_21, %c0_22, %c0_23] : memref<1x4x128xf32, #tpu.memory_space<vmem>>, vector<1x4x128xf32>
    %35 = vector.shape_cast %34 : vector<1x4x128xf32> to vector<4x128xf32>
    %36 = vector.shape_cast %33 : vector<4x128xf32> to vector<1x4x128xf32>
    tpu.vector_store %arg6[%c0_21, %c0_22, %c0_23], %36 {strides = array<i32>} : memref<1x4x128xf32, #tpu.memory_space<vmem>>, vector<1x4x128xf32>,
    return
  }
  func.func @transform_0(%arg0: i32, %arg1: i32, %arg2: i32) -> (i32, i32, i32, i32) {
    %c1_i32 = arith.constant 1 : i32
    %0 = arith.muli %arg1, %c1_i32 : i32
    %1 = arith.addi %0, %arg2 : i32
    %c0_i32 = arith.constant 0 : i32
    %c0_i32_0 = arith.constant 0 : i32
    %c0_i32_1 = arith.constant 0 : i32
    return %arg0, %c0_i32, %1, %c0_i32_0 : i32, i32, i32, i32
  }
  func.func @transform_1(%arg0: i32, %arg1: i32, %arg2: i32) -> (i32, i32, i32, i32) {
    %c1_i32 = arith.constant 1 : i32
    %0 = arith.muli %arg1, %c1_i32 : i32
    %1 = arith.addi %0, %arg2 : i32
    %c0_i32 = arith.constant 0 : i32
    %c0_i32_0 = arith.constant 0 : i32
    %c0_i32_1 = arith.constant 0 : i32
    return %arg0, %c0_i32, %1, %c0_i32_0 : i32, i32, i32, i32
  }
  func.func @transform_2(%arg0: i32, %arg1: i32, %arg2: i32) -> (i32, i32, i32) {
    %c1_i32 = arith.constant 1 : i32
    %0 = arith.muli %arg0, %c1_i32 : i32
    %1 = arith.addi %0, %arg1 : i32
    %c0_i32 = arith.constant 0 : i32
    %c0_i32_0 = arith.constant 0 : i32
    %c0_i32_1 = arith.constant 0 : i32
    return %1, %c0_i32, %c0_i32_0 : i32, i32, i32
  }
  func.func @transform_3(%arg0: i32, %arg1: i32, %arg2: i32) -> (i32, i32, i32) {
    %c1_i32 = arith.constant 1 : i32
    %0 = arith.muli %arg0, %c1_i32 : i32
    %1 = arith.addi %0, %arg1 : i32
    %c0_i32 = arith.constant 0 : i32
    %c0_i32_0 = arith.constant 0 : i32
    %c0_i32_1 = arith.constant 0 : i32
    return %1, %c0_i32, %c0_i32_0 : i32, i32, i32
  }
}

</mosaic_0001>

<bundles_post_ra>
// kernel: tpu_custom_call.1
= control target key start
LH: loop header
LB: loop body
LE: loop exit
PB: predicated region body
PF: predicated region fallthrough
CT: control target
= control target key end

     0   :  { %9 = vsyncpa [#allocation3], 0  ;;  %s1390_s0 = inlined_call_operand.hbm [shape: f32[2,4,32,128], index: 0, kind: input, shape index: {}]   ;;  %s1391_s1 = inlined_call_operand.hbm [shape: u8[2,1,32,128], index: 1, kind: input, shape index: {}]   ;;  %s1392_s2 = inlined_call_operand.hbm [shape: f32[2,4,128], index: 2, kind: output, shape index: {0}]   ;;  %s1393_s3 = inlined_call_operand.hbm [shape: f32[2,4,128], index: 3, kind: output, shape index: {1}]  }
   0x1   :  { %11 = vsyncpa [#allocation3 + $0x1], 0 }
   0x2   :  { %12 = vsyncpa [#allocation6], 0 }
   0x3   :  { %14 = vsyncpa [#allocation6 + $0x1], 0 }
   0x4   :  { %15 = vsyncpa [#allocation4], 0 }
   0x5   :  { %17 = vsyncpa [#allocation4 + $0x1], 0 }
   0x6   :  { %18 = vsyncpa [#allocation9], 0 }
   0x7   :  { %20 = vsyncpa [#allocation9 + $0x1], 0  ;;  %s1083_s12 = smov 0   ;;  %s1085_s13 = smov 0  }
   0x8   :  { %s1087_s14 = smov 0   ;;  %s1089_s15 = smov 0  }
   0x9   :  { %s1091_s16 = smov 0   ;;  %s1093_s17 = smov 0  }
   0xa LB: > { %s736_s18 = sadd.s32 4294967295, %s1058_s17   ;;  %s737_s19 = sadd.s32 4294967294, %s1058_s17   ;;  %s1058_s17 = sphi %s1093_s17, %s26_s17   ;;  %s1054_s16 = sphi %s1091_s16, %s1403_s16   ;;  %s1050_s15 = sphi %s1089_s15, %s1402_s15   ;;  %s1046_s14 = sphi %s1087_s14, %s1401_s14   ;;  %s1042_s13 = sphi %s1085_s13, %s1400_s13   ;;  %s1038_s12 = sphi %s1083_s12, %s1399_s12  }
   0xb   : > { %s45_s20 = sadd.s32 1, %s1054_s16  ;;  %s56_s21 = sadd.s32 1, %s1046_s14 }
   0xc   : > { %p47_p0 = scmp.ge.s32.totalorder %s45_s20, 2  ;;  %p63_p1 = scmp.ne.s32.totalorder %s1046_s14, %s1042_s13 }
   0xd   : > { %p64_p2 = scmp.eq.s32.totalorder %s1058_s17, 0  ;;  %p69_p3 = scmp.ne.s32.totalorder %s1042_s13, %s1038_s12 }
   0xe   : > { %s1405_s20 = smov (%p47_p0, %s45_s20), 0  ;;  %p70_p5 = scmp.eq.s32.totalorder %s736_s18, 0 }
   0xf   : > { %p1124_p4 = por %p64_p2, %p63_p1  ;;  %s51_s23 = ssub.s32 %s1054_s16, %s1405_s20 }
  0x10   : > { %p125_p6 = scmp.eq.s32.totalorder %s736_s18, 1  ;;  %p54_p7 = scmp.eq.s32.totalorder %s51_s23, 0 }
  0x11   : > { %p1130_p8 = por %p70_p5, %p69_p3  ;;  %p131_p10 = scmp.eq.s32.totalorder %s737_s19, 1 }
  0x12   : > { %p1134_p9 = por %p125_p6, %p63_p1  ;;  %p739_p12 = scmp.ge.s32.totalorder %s1058_s17, 2 }
  0x13   : > { %s1139_s26 = scalar_select %p54_p7, %s1046_s14, %s56_s21  }
  0x14   : > { %p1141_p11 = por %p131_p10, %p69_p3  ;;  %p795_p13 = scmp.lt.s32.totalorder %s1058_s17, 2 }
  0x15   : > { %s179_s28 = sand.u32 1, %s1046_s14   ;;  %s772_s30 = sshll.u32 %s1054_s16, 7 }
  0x16   : > { %s740_s29 = sshll.u32 %s179_s28, 7  ;;  %s191_s6 = scalar_lea.hbm %s1390_s0, %s772_s30 }
  0x17   : > { %s183_s7 = scalar_lea.vmem [#allocation2], %s740_s29  ;;  %s192_s9 = sshll.u32 %s191_s6, 4  ;;  %s193_s9 = int_to_ptr.hbm [resolvable:$true] %s192_s9 }
  0x18   : > { %s194_s8 = sshll.u32 %s183_s7, 4  ;;  %p1154_p0 = pnand %p795_p13, %p1124_p4  ;;  %s195_s8 = int_to_ptr.vmem [resolvable:$true] %s194_s8 }
  0x19   : > { %p745_p1 = scmp.ge.s32.totalorder %s1058_s17, 1  ;;  %s180_s11 = scalar_lea.sflag [#allocation3], %s179_s28 }
  0x1a   : > { %s1060_s18 = smov 128   ;;  %s1061_s19 = smov 8  }
  0x1b   : > { %784 = dma.hbm_to_vmem [thread:$0]  (!%p1154_p0), %s193_s9, 2048, %s195_s8, %s180_s11, %s1060_s18, %s1060_s18, %s1061_s19  }
  0x1c   : > { %p223_p2 = scmp.lt.s32.totalorder %s1058_s17, 3  ;;  %s743_s21 = sshll.u32 %s179_s28, 3 }
  0x1d   : > { %s744_s23 = sshll.u32 %s1054_s16, 3  ;;  %s208_s4 = scalar_lea.vmem [#allocation5], %s743_s21 }
  0x1e   : > { %p224_p3 = pnand %p745_p1, %p223_p2  ;;  %s214_s22 = scalar_lea.hbm %s1391_s1, %s744_s23 }
  0x1f   : > { %s218_s5 = sshll.u32 %s208_s4, 4  ;;  %s216_s6 = sshll.u32 %s214_s22, 4  ;;  %s219_s5 = int_to_ptr.vmem [resolvable:$true] %s218_s5  ;;  %s217_s6 = int_to_ptr.hbm [resolvable:$true] %s216_s6 }
  0x20   : > { %s205_s7 = scalar_lea.sflag [#allocation6], %s179_s28  ;;  %227 = sbr.rel (%p224_p3) target bundleno = 115 (0x73), region = 28 }
  0x21   : > { %787 = dma.hbm_to_vmem [thread:$0]  (!%p1154_p0), %s217_s6, 128, %s219_s5, %s205_s7  }
  0x22   : > { %s1169_s8 = sand.u32 (!%p224_p3), 1, %s1042_s13  }
  0x23   : > { %s746_s9 = sshll.u32 (!%p224_p3), %s1169_s8, 7  ;;  %s230_s11 = scalar_lea.sflag (!%p224_p3), [#allocation3], %s1169_s8 }
  0x24   : > { %s1173_s18 = scalar_lea.vmem (!%p224_p3), [#allocation2], %s746_s9 }
  0x25   : > { %1021 = dma.done.wait (%p1130_p8), %s230_s11, 2048  }
  0x26   : > { %1023 = vsyncadd (%p1130_p8), %s230_s11, 4294965248  ;;  %s747_s28 = sshll.u32 %s1169_s8, 3  ;;  %s240_s10 = scalar_lea.sflag [#allocation6], %s1169_s8 }
  0x27   : > { %s243_s19 = scalar_lea.vmem [#allocation5], %s747_s28 }
  0x28   : > { %1025 = dma.done.wait (%p1130_p8), %s240_s10, 128  }
  0x29   : > { %1027 = vsyncadd (%p1130_p8), %s240_s10, 4294967168  ;;  %s748_s21 = sshll.u32 %s1169_s8, 2  ;;  %v1062_v0 = vmov 0.0   ;;  %v288_v1 = vld [vmem:[%s1173_s18] sm:$0xff]  ;;  %v289_v2 = vld [vmem:[%s1173_s18 + $0x8] sm:$0xff]  ;;  %s768_s24 = sshll.u32 %s1050_s15, 2 }
  0x2a   : > { %s1186_s23 = scalar_lea.vmem [#allocation7], %s748_s21  ;;  %s1190_s29 = scalar_lea.vmem [#allocation8], %s748_s21  ;;  %v290_v3 = vld [vmem:[%s1173_s18 + $0x10] sm:$0xff]  ;;  %v291_v4 = vld [vmem:[%s1173_s18 + $0x18] sm:$0xff]  ;;  %v313_v5 = vmul.f32 0.5, %v288_v1  ;;  %v314_v6 = vmul.f32 0.5, %v289_v2 }
  0x2b   : > { %286 = vst [vmem:[%s1186_s23] sm:$0xf] %v1062_v0  ;;  %v315_v7 = vmul.f32 0.5, %v290_v3  ;;  %v292_v8 = vld [vmem:[%s1173_s18 + $0x20] sm:$0xff]  ;;  %v293_v9 = vld [vmem:[%s1173_s18 + $0x28] sm:$0xff]  ;;  %v294_v10 = vld [vmem:[%s1173_s18 + $0x30] sm:$0xff]  ;;  %v316_v11 = vmul.f32 0.5, %v291_v4  ;;  %s571_s4 = scalar_lea.hbm %s1392_s2, %s768_s24 }
  0x2c   : > { %287 = vst [vmem:[%s1190_s29] sm:$0xf] %v1062_v0  ;;  %848 = vtanh.f32 %v313_v5  ;;  %v295_v12 = vld [vmem:[%s1173_s18 + $0x38] sm:$0xff]  ;;  %v296_v13 = vld [vmem:[%s1173_s18 + $0x40] sm:$0xff]  ;;  %v297_v14 = vld [vmem:[%s1173_s18 + $0x48] sm:$0xff]  ;;  %v317_v17 = vmul.f32 0.5, %v292_v8  ;;  %v318_v18 = vmul.f32 0.5, %v293_v9 }
  0x2d   : > { %850 = vtanh.f32 %v314_v6  ;;  %v298_v15 = vld [vmem:[%s1173_s18 + $0x50] sm:$0xff]  ;;  %v304_v16 = vld [vmem:[%s243_s19] sm:$0xff]  ;;  %v319_v19 = vmul.f32 0.5, %v294_v10  ;;  %v299_v20 = vld [vmem:[%s1173_s18 + $0x58] sm:$0xff]  ;;  %v320_v28 = vmul.f32 0.5, %v295_v12  ;;  %v321_v29 = vmul.f32 0.5, %v296_v13 }
  0x2e   : > { %852 = vtanh.f32 %v315_v7  ;;  %v300_v21 = vld [vmem:[%s1173_s18 + $0x60] sm:$0xff]  ;;  %v305_v22 = vunpack.c.0.s8 %v304_v16  ;;  %v306_v23 = vunpack.c.1.s8 %v304_v16  ;;  %v307_v24 = vunpack.c.2.s8 %v304_v16  ;;  %v301_v26 = vld [vmem:[%s1173_s18 + $0x68] sm:$0xff]  ;;  %v302_v27 = vld [vmem:[%s1173_s18 + $0x70] sm:$0xff]  ;;  %s573_s5 = sshll.u32 %s1186_s23, 4  ;;  %s575_s6 = sshll.u32 %s571_s4, 4  ;;  %s574_s5 = int_to_ptr.vmem [resolvable:$true] %s573_s5  ;;  %s576_s6 = int_to_ptr.hbm [resolvable:$true] %s575_s6 }
  0x2f   : > { %v308_v25 = vunpack.c.3.s8 %v304_v16  ;;  %v322_v30 = vmul.f32 0.5, %v297_v14  ;;  %854 = vtanh.f32 %v316_v11  ;;  %v303_v31 = vld [vmem:[%s1173_s18 + $0x78] sm:$0xff]  ;;  %v323_v35 = vmul.f32 0.5, %v298_v15  ;;  %s555_s7 = scalar_lea.sflag [#allocation4], %s1169_s8  ;;  %s954_s9 = sshra.s32 %s576_s6, 4  ;;  %s955_s9 = int_to_ptr.hbm [resolvable:$true] %s954_s9 }
  0x30   : > { %v1210_v32 = vand.u32 255, %v305_v22  ;;  %v1212_v33 = vand.u32 255, %v306_v23  ;;  %v1214_v34 = vand.u32 255, %v307_v24  ;;  %v324_v38 = vmul.f32 0.5, %v299_v20  ;;  %s956_s11 = scalar_lea.hbm %s955_s9, 4  ;;  %s960_s10 = scalar_lea.hbm %s1392_s2, 8 }
  0x31   : > { %v1216_v37 = vand.u32 255, %v308_v25  ;;  %v325_v39 = vmul.f32 0.5, %v300_v21  ;;  %856 = vtanh.f32 %v317_v17  ;;  %v326_v41 = vmul.f32 0.5, %v301_v26  ;;  %p957_p4 = scmp.ne.s32.totalorder %s955_s9, %s956_s11  ;;  %p961_p7 = scmp.lt.s32.totalorder %s955_s9, %s1392_s2 }
  0x32   : > { %v849_v36 = vpop.eup %848  ;;  %v327_v42 = vmul.f32 0.5, %v302_v27  ;;  %858 = vtanh.f32 %v318_v18  ;;  %v328_v45 = vmul.f32 0.5, %v303_v31  ;;  %vm377_vm0 = vcmp.eq.s32.totalorder %v1210_v32, 0  ;;  %p962_p8 = scmp.lt.s32.totalorder %s960_s10, %s956_s11 }
  0x33   : > { %v851_v40 = vpop.eup %850  ;;  %v345_v43 = vmul.f32 0.5, %v849_v36  ;;  %860 = vtanh.f32 %v319_v19  ;;  %vm378_vm1 = vcmp.eq.s32.totalorder %v1212_v33, 0  ;;  %vm379_vm2 = vcmp.eq.s32.totalorder %v1214_v34, 0  ;;  %p958_p5 = pnand %p957_p4, %p1134_p9 }
  0x34   : > { %v853_v44 = vpop.eup %852  ;;  %v346_v46 = vmul.f32 0.5, %v851_v40  ;;  %862 = vtanh.f32 %v320_v28  ;;  %vm380_vm3 = vcmp.eq.s32.totalorder %v1216_v37, 0  ;;  %vm381_vm4 = vcmp.eq.s32.totalorder %v1210_v32, 1  ;;  %p963_p10 = por %p962_p8, %p961_p7 }
  0x35   : > { %v347_v47 = vmul.f32 0.5, %v853_v44  ;;  %v855_v48 = vpop.eup %854  ;;  %864 = vtanh.f32 %v321_v29  ;;  %v1221_v49 = vadd.f32 0.5, %v345_v43  ;;  %vm382_vm5 = vcmp.eq.s32.totalorder %v1212_v33, 1  ;;  %p959_p6 = pneg %p958_p5 }
  0x36   : > { %866 = vtanh.f32 %v322_v30  ;;  %v348_v50 = vmul.f32 0.5, %v855_v48  ;;  %v1225_v51 = vadd.f32 0.5, %v346_v46  ;;  %vm383_vm6 = vcmp.eq.s32.totalorder %v1214_v34, 1 }
  0x37   : > { %v857_v52 = vpop.eup %856  ;;  %868 = vtanh.f32 %v323_v35  ;;  %v1228_v53 = vadd.f32 0.5, %v347_v47  ;;  %vm384_vm7 = vcmp.eq.s32.totalorder %v1216_v37, 1  ;;  %vm385_vm8 = vcmp.eq.s32.totalorder %v1210_v32, 2  ;;  %p964_p13 = pnand %p963_p10, %p959_p6 }
  0x38   : > { %v859_v54 = vpop.eup %858  ;;  %870 = vtanh.f32 %v324_v38  ;;  %v349_v55 = vmul.f32 0.5, %v857_v52  ;;  %vm386_vm9 = vcmp.eq.s32.totalorder %v1212_v33, 2  ;;  %v1234_v58 = vadd.f32 0.5, %v348_v50 }
  0x39   : > { %v861_v56 = vpop.eup %860  ;;  %872 = vtanh.f32 %v325_v39  ;;  %v350_v57 = vmul.f32 0.5, %v859_v54  ;;  %vm387_vm10 = vcmp.eq.s32.totalorder %v1214_v34, 2  ;;  %vm388_vm11 = vcmp.eq.s32.totalorder %v1216_v37, 2 }
  0x3a   : > { %v863_v59 = vpop.eup %862  ;;  %874 = vtanh.f32 %v326_v41  ;;  %v351_v60 = vmul.f32 0.5, %v861_v56  ;;  %vm389_vm12 = vcmp.eq.s32.totalorder %v1210_v32, 3  ;;  %v1239_v63 = vadd.f32 0.5, %v349_v55 }
  0x3b   : > { %v865_v61 = vpop.eup %864  ;;  %876 = vtanh.f32 %v327_v42  ;;  %v352_v62 = vmul.f32 0.5, %v863_v59  ;;  %vm390_vm13 = vcmp.eq.s32.totalorder %v1212_v33, 3  ;;  %v1242_v3 = vadd.f32 0.5, %v350_v57 }
  0x3c   : > { %v867_v1 = vpop.eup %866  ;;  %878 = vtanh.f32 %v328_v45  ;;  %v353_v2 = vmul.f32 0.5, %v865_v61  ;;  %vm391_vm14 = vcmp.eq.s32.totalorder %v1214_v34, 3  ;;  %v1245_v6 = vadd.f32 0.5, %v351_v60 }
  0x3d   : > { %v869_v4 = vpop.eup %868  ;;  %v354_v5 = vmul.f32 0.5, %v867_v1  ;;  %vm392_vm15 = vcmp.eq.s32.totalorder %v1216_v37, 3  ;;  %v750_v7 = vsel %vm377_vm0, 1.0, %v1062_v0  ;;  %v1251_v10 = vadd.f32 0.5, %v352_v62 }
  0x3e   : > { %v871_v8 = vpop.eup %870  ;;  %v355_v9 = vmul.f32 0.5, %v869_v4  ;;  %v751_v11 = vsel %vm378_vm1, 1.0, %v1062_v0  ;;  %v752_v12 = vsel %vm379_vm2, 1.0, %v1062_v0  ;;  %v1259_v15 = vadd.f32 0.5, %v353_v2 }
  0x3f   : > { %v873_v13 = vpop.eup %872  ;;  %v356_v14 = vmul.f32 0.5, %v871_v8  ;;  %v753_v16 = vsel %vm380_vm3, 1.0, %v1062_v0  ;;  %v754_v17 = vsel %vm381_vm4, 1.0, %v1062_v0  ;;  %v1267_v20 = vadd.f32 0.5, %v354_v5 }
  0x40   : > { %v875_v18 = vpop.eup %874  ;;  %v357_v19 = vmul.f32 0.5, %v873_v13  ;;  %v755_v21 = vsel %vm382_vm5, 1.0, %v1062_v0  ;;  %v756_v22 = vsel %vm383_vm6, 1.0, %v1062_v0  ;;  %v371_v25 = vadd.f32 0.5, %v355_v9 }
  0x41   : > { %v877_v23 = vpop.eup %876  ;;  %v358_v24 = vmul.f32 0.5, %v875_v18  ;;  %v757_v26 = vsel %vm384_vm7, 1.0, %v1062_v0  ;;  %v758_v27 = vsel %vm385_vm8, 1.0, %v1062_v0  ;;  %v372_v30 = vadd.f32 0.5, %v356_v14 }
  0x42   : > { %v879_v28 = vpop.eup %878  ;;  %v359_v29 = vmul.f32 0.5, %v877_v23  ;;  %v759_v31 = vsel %vm386_vm9, 1.0, %v1062_v0  ;;  %v760_v35 = vsel %vm387_vm10, 1.0, %v1062_v0  ;;  %v373_v38 = vadd.f32 0.5, %v357_v19 }
  0x43   : > { %v360_v36 = vmul.f32 0.5, %v879_v28  ;;  %v761_v39 = vsel %vm388_vm11, 1.0, %v1062_v0  ;;  %v762_v40 = vsel %vm389_vm12, 1.0, %v1062_v0  ;;  %v374_v41 = vadd.f32 0.5, %v358_v24 }
  0x44   : > { %v375_v42 = vadd.f32 0.5, %v359_v29  ;;  %v426_v43 = vmul.f32 %v750_v7, %v1221_v49  ;;  %v427_v44 = vmul.f32 %v751_v11, %v1225_v51  ;;  %v763_v45 = vsel %vm390_vm13, 1.0, %v1062_v0 }
  0x45   : > { %v764_v46 = vsel %vm391_vm14, 1.0, %v1062_v0  ;;  %v765_v47 = vsel %vm392_vm15, 1.0, %v1062_v0  ;;  %v430_v32 = vmul.f32 %v754_v17, %v1239_v63  ;;  %v376_v48 = vadd.f32 0.5, %v360_v36 }
  0x46   : > { %v428_v50 = vmul.f32 %v752_v12, %v1228_v53  ;;  %v431_v52 = vmul.f32 %v755_v21, %v1242_v3  ;;  %v434_v54 = vmul.f32 %v758_v27, %v1259_v15  ;;  %v432_v33 = vmul.f32 %v756_v22, %v1245_v6 }
  0x47   : > { %v435_v55 = vmul.f32 %v759_v31, %v1267_v20  ;;  %v436_v56 = vmul.f32 %v760_v35, %v371_v25  ;;  %v438_v34 = vmul.f32 %v762_v40, %v373_v38  ;;  %v429_v57 = vmul.f32 %v753_v16, %v1234_v58 }
  0x48   : > { %v439_v59 = vmul.f32 %v763_v45, %v374_v41  ;;  %v440_v37 = vmul.f32 %v764_v46, %v375_v42  ;;  %v442_v0 = vadd.f32 %v427_v44, %v426_v43  ;;  %v433_v60 = vmul.f32 %v757_v26, %v1251_v10 }
  0x49   : > { %v437_v61 = vmul.f32 %v761_v39, %v372_v30  ;;  %v451_v62 = vadd.f32 %v431_v52, %v430_v32  ;;  %v460_v1 = vadd.f32 %v435_v55, %v434_v54  ;;  %v441_v2 = vmul.f32 %v765_v47, %v376_v48 }
  0x4a   : > { %v443_v4 = vadd.f32 %v442_v0, %v428_v50  ;;  %v469_v5 = vadd.f32 %v439_v59, %v438_v34  ;;  %v492_v8 = vadd.f32 %v750_v7, %v1221_v49  ;;  %v493_v14 = vadd.f32 %v751_v11, %v1225_v51 }
  0x4b   : > { %v452_v9 = vadd.f32 %v451_v62, %v432_v33  ;;  %v461_v13 = vadd.f32 %v460_v1, %v436_v56  ;;  %v494_v18 = vadd.f32 %v752_v12, %v1228_v53  ;;  %v495_v24 = vadd.f32 %v753_v16, %v1234_v58 }
  0x4c   : > { %v444_v19 = vadd.f32 %v443_v4, %v429_v57  ;;  %v470_v23 = vadd.f32 %v469_v5, %v440_v37  ;;  %v496_v28 = vadd.f32 %v754_v17, %v1239_v63  ;;  %v497_v43 = vadd.f32 %v755_v21, %v1242_v3 }
  0x4d   : > { %v453_v29 = vadd.f32 %v452_v9, %v433_v60  ;;  %v462_v36 = vadd.f32 %v461_v13, %v437_v61  ;;  %v498_v44 = vadd.f32 %v756_v22, %v1245_v6  ;;  %v499_v7 = vadd.f32 %v757_v26, %v1251_v10 }
  0x4e   : > { %v445_v32 = vrot.slane %v444_v19, 4  ;;  %v471_v49 = vadd.f32 %v470_v23, %v441_v2  ;;  %v500_v51 = vadd.f32 %v758_v27, %v1259_v15  ;;  %v501_v12 = vadd.f32 %v759_v31, %v1267_v20 }
  0x4f   : > { %v454_v11 = vrot.slane %v453_v29, 4  ;;  %v463_v53 = vrot.slane %v462_v36, 4  ;;  %v502_v50 = vadd.f32 %v760_v35, %v371_v25  ;;  %vm482_vm0 = vcmask 1041409  }
  0x50   : > { %v446_v58 = vadd.f32 %v445_v32, %v444_v19  ;;  %v472_v16 = vrot.slane %v471_v49, 4  ;;  %v503_v63 = vadd.f32 %v761_v39, %v372_v30  ;;  %v504_v17 = vadd.f32 %v762_v40, %v373_v38 }
  0x51   : > { %v455_v52 = vadd.f32 %v454_v11, %v453_v29  ;;  %v464_v3 = vadd.f32 %v463_v53, %v462_v36  ;;  %vm484_vm1 = vcmask 1042434   ;;  %v505_v6 = vadd.f32 %v763_v45, %v374_v41 }
  0x52   : > { %v506_v21 = vadd.f32 %v764_v46, %v375_v42  ;;  %v447_v22 = vrot.slane %v446_v58, 2  ;;  %v473_v10 = vadd.f32 %v472_v16, %v471_v49  ;;  %v507_v26 = vadd.f32 %v765_v47, %v376_v48 }
  0x53   : > { %v508_v15 = vadd.f32 %v493_v14, %v492_v8  ;;  %v456_v27 = vrot.slane %v455_v52, 2  ;;  %v465_v54 = vrot.slane %v464_v3, 2  ;;  %v517_v33 = vadd.f32 %v497_v43, %v496_v28  ;;  %v425_v8 = vld [vmem:[%s1186_s23] sm:$0xf] }
  0x54   : > { %v526_v20 = vadd.f32 %v501_v12, %v500_v51  ;;  %v448_v25 = vadd.f32 %v447_v22, %v446_v58  ;;  %v474_v31 = vrot.slane %v473_v10, 2  ;;  %v535_v55 = vadd.f32 %v505_v6, %v504_v17 }
  0x55   : > { %v509_v35 = vadd.f32 %v508_v15, %v494_v18  ;;  %v457_v30 = vadd.f32 %v456_v27, %v455_v52  ;;  %v466_v38 = vadd.f32 %v465_v54, %v464_v3  ;;  %v518_v39 = vadd.f32 %v517_v33, %v498_v44 }
  0x56   : > { %v527_v40 = vadd.f32 %v526_v20, %v502_v50  ;;  %v449_v41 = vrot.slane %v448_v25, 1  ;;  %v475_v42 = vadd.f32 %v474_v31, %v473_v10  ;;  %v536_v46 = vadd.f32 %v535_v55, %v506_v21 }
  0x57   : > { %v510_v45 = vadd.f32 %v509_v35, %v495_v24  ;;  %v458_v47 = vrot.slane %v457_v30, 1  ;;  %v467_v48 = vrot.slane %v466_v38, 1  ;;  %v519_v56 = vadd.f32 %v518_v39, %v499_v7 }
  0x58   : > { %v528_v34 = vadd.f32 %v527_v40, %v503_v63  ;;  %v450_v57 = vadd.f32 %v449_v41, %v448_v25  ;;  %v476_v59 = vrot.slane %v475_v42, 1  ;;  %v537_v0 = vadd.f32 %v536_v46, %v507_v26 }
  0x59   : > { %v511_v37 = vrot.slane %v510_v45, 4  ;;  %v459_v60 = vadd.f32 %v458_v47, %v457_v30  ;;  %v468_v61 = vadd.f32 %v467_v48, %v466_v38  ;;  %v520_v62 = vrot.slane %v519_v56, 4 }
  0x5a   : > { %v529_v1 = vrot.slane %v528_v34, 4  ;;  %v477_v2 = vadd.f32 %v476_v59, %v475_v42  ;;  %vm486_vm2 = vcmask 1043459   ;;  %v538_v5 = vrot.slane %v537_v0, 4 }
  0x5b   : > { %v512_v4 = vadd.f32 %v511_v37, %v510_v45  ;;  %v483_v9 = vsel %vm482_vm0, %v459_v60, %v450_v57  ;;  %v521_v13 = vadd.f32 %v520_v62, %v519_v56 }
  0x5c   : > { %v530_v14 = vadd.f32 %v529_v1, %v528_v34  ;;  %v485_v18 = vsel %vm484_vm1, %v468_v61, %v483_v9  ;;  %v539_v23 = vadd.f32 %v538_v5, %v537_v0 }
  0x5d   : > { %v513_v19 = vrot.slane %v512_v4, 2  ;;  %v487_v24 = vsel %vm486_vm2, %v477_v2, %v485_v18  ;;  %v522_v28 = vrot.slane %v521_v13, 2 }
  0x5e   : > { %v531_v29 = vrot.slane %v530_v14, 2  ;;  %v489_v36 = vadd.f32 %v487_v24, %v425_v8  ;;  %v540_v44 = vrot.slane %v539_v23, 2 }
  0x5f   : > { %v514_v43 = vadd.f32 %v513_v19, %v512_v4  ;;  %v523_v32 = vadd.f32 %v522_v28, %v521_v13 }
  0x60   : > { %v532_v49 = vadd.f32 %v531_v29, %v530_v14  ;;  %490 = vst [vmem:[%s1186_s23] sm:$0xf] %v489_v36  ;;  %v541_v51 = vadd.f32 %v540_v44, %v539_v23 }
  0x61   : > { %v515_v7 = vrot.slane %v514_v43, 1  ;;  %v524_v11 = vrot.slane %v523_v32, 1 }
  0x62   : > { %v533_v53 = vrot.slane %v532_v49, 1 }
  0x63   : > { %967 = shalt.err (!%p964_p13)
}
  0x64   : > { %777 = dma.vmem_to_hbm [thread:$0]  (%p1134_p9), %s574_s5, 64, %s576_s6, %s555_s7   ;;  %v516_v12 = vadd.f32 %v515_v7, %v514_v43  ;;  %v542_v50 = vrot.slane %v541_v51, 1  ;;  %v525_v58 = vadd.f32 %v524_v11, %v523_v32  ;;  %v534_v16 = vadd.f32 %v533_v53, %v532_v49  ;;  %v491_v17 = vld [vmem:[%s1190_s29] sm:$0xf] }
  0x65   : > { %s586_s22 = scalar_lea.hbm %s1393_s3, %s768_s24  ;;  %s588_s4 = sshll.u32 %s1190_s29, 4  ;;  %s589_s4 = int_to_ptr.vmem [resolvable:$true] %s588_s4 }
  0x66   : > { %v543_v63 = vadd.f32 %v542_v50, %v541_v51  ;;  %v548_v52 = vsel %vm482_vm0, %v525_v58, %v516_v12  ;;  %s590_s9 = sshll.u32 %s586_s22, 4  ;;  %s560_s15 = scalar_lea.sflag [#allocation9], %s1169_s8  ;;  %s591_s9 = int_to_ptr.hbm [resolvable:$true] %s590_s9 }
  0x67   : > { %v549_v3 = vsel %vm484_vm1, %v534_v16, %v548_v52  ;;  %s982_s5 = sshra.s32 %s591_s9, 4  ;;  %s988_s11 = scalar_lea.hbm %s1393_s3, 8  ;;  %s983_s5 = int_to_ptr.hbm [resolvable:$true] %s982_s5 }
  0x68   : > { %v550_v6 = vsel %vm486_vm2, %v543_v63, %v549_v3  ;;  %s984_s24 = scalar_lea.hbm %s983_s5, 4  ;;  %p989_p3 = scmp.lt.s32.totalorder %s983_s5, %s1393_s3 }
  0x69   : > { %v552_v21 = vadd.f32 %v550_v6, %v491_v17  ;;  %p985_p0 = scmp.ne.s32.totalorder %s983_s5, %s984_s24  ;;  %p990_p4 = scmp.lt.s32.totalorder %s988_s11, %s984_s24 }
  0x6b   : > { %553 = vst [vmem:[%s1190_s29] sm:$0xf] %v552_v21  ;;  %p986_p1 = pnand %p985_p0, %p1134_p9  ;;  %p991_p5 = por %p990_p4, %p989_p3 }
  0x6d   : > { %p987_p2 = pneg %p986_p1 }
  0x6f   : > { %p992_p6 = pnand %p991_p5, %p987_p2 }
  0x71   : > { %995 = shalt.err (!%p992_p6)
}
  0x72   : > { %778 = dma.vmem_to_hbm [thread:$0]  (%p1134_p9), %s589_s4, 64, %s591_s9, %s560_s15  }
  0x73 PF: > { %s602_s8 = sand.u32 1, %s1038_s12   ;;  %p789_p7 = pnand %p739_p12, %p1141_p11 }
  0x74   : > { %s603_s29 = scalar_lea.sflag [#allocation4], %s602_s8 }
  0x75   : > { %p790_p8 = pneg %p789_p7 }
  0x77   : > { %1029 = dma.done.wait (%p790_p8), %s603_s29, 64  }
  0x78   : > { %1031 = vsyncadd (%p790_p8), %s603_s29, 4294967232  ;;  %s613_s10 = scalar_lea.sflag [#allocation9], %s602_s8 }
  0x79   : > { %1033 = dma.done.wait (%p790_p8), %s613_s10, 64  }
  0x7a   : > { %1035 = vsyncadd (%p790_p8), %s613_s10, 4294967232  ;;  %s26_s17 = sadd.s32 1, %s1058_s17   ;;  %s1399_s12 = smov %s1042_s13 }
  0x7b   : > { %p23_p10 = scmp.ge.s32.totalorder %s26_s17, 4   ;;  %s1400_s13 = smov %s1046_s14 }
  0x7c   : > { %s1401_s14 = smov %s1139_s26  ;;  %s1402_s15 = smov %s1054_s16 }
  0x7d   : > { %s1403_s16 = smov %s1405_s20  ;;  %25 = sbr.rel (!%p23_p10) target bundleno = 10 (0xa), region = 107 }
  0x82   :  { %619 = vsyncpa [#allocation3], 1 }
  0x83   :  { %621 = vsyncpa [#allocation3 + $0x1], 1 }
  0x84   :  { %622 = vsyncpa [#allocation6], 1 }
  0x85   :  { %624 = vsyncpa [#allocation6 + $0x1], 1 }
  0x86   :  { %625 = vsyncpa [#allocation4], 1 }
  0x87   :  { %627 = vsyncpa [#allocation4 + $0x1], 1 }
  0x88   :  { %628 = vsyncpa [#allocation9], 1 }
  0x89   :  { %630 = vsyncpa [#allocation9 + $0x1], 1 }

</bundles_post_ra>
